<compile_context>
chip_gen: v7x
topology: tpu7x:2x2x1
jax: 0.10.0
libtpu: 0.0.40
codegen_flags: <defaults>
</compile_context>

<pallas_src>
import jax
import jax.numpy as jnp
from jax import lax
from jax.experimental import pallas as pl
from jax.experimental.pallas import tpu as pltpu

KSIZE = 3          # Conv3d kernel size
BN_EPS = 1e-5      # nn.BatchNorm3d default eps
NEG_SLOPE = 0.01   # nn.LeakyReLU default negative_slope
LANE = 128
SUBLANE = 8


def _round_up(x, m):
    return (x + m - 1) // m * m


# ---------------------------------------------------------------------------
# Pallas kernels
# ---------------------------------------------------------------------------
def conv_stats_kernel(p_ref, w_ref, y_ref, psum_ref, psq_ref):
    """Conv-as-matmul tile + per-tile BN partial statistics.

    p_ref   : (TM, Kp)  bf16 im2col rows for this tile
    w_ref   : (Kp, Cp)  bf16 weights (same block every step -> VMEM resident)
    y_ref   : (TM, Cp)  f32 conv output tile
    psum_ref: (8,  Cp)  f32 per-tile sum   (broadcast over 8 sublanes)
    psq_ref : (8,  Cp)  f32 per-tile sum^2 (broadcast over 8 sublanes)
    """
    y = jnp.dot(p_ref[...], w_ref[...], preferred_element_type=jnp.float32)
    y_ref[...] = y
    s = jnp.sum(y, axis=0, keepdims=True)
    sq = jnp.sum(y * y, axis=0, keepdims=True)
    # Write the (1, Cp) partials broadcast over 8 sublanes to keep the output
    # block (8, Cp)-aligned; the wrapper divides the reduction by 8.
    psum_ref[...] = jnp.broadcast_to(s, psum_ref.shape)
    psq_ref[...] = jnp.broadcast_to(sq, psq_ref.shape)


def bn_lrelu_kernel(y_ref, scale_ref, shift_ref, o_ref):
    """Apply y*scale + shift then LeakyReLU(0.01) on a (TM, Cp) tile."""
    z = y_ref[...] * scale_ref[...] + shift_ref[...]
    o_ref[...] = jnp.where(z >= 0, z, NEG_SLOPE * z)


def maxpool_kernel(x_ref, o_ref):
    """MaxPool3d(2,2) block.

    x_ref: (1, 2, 2, W, C)  two D-rows x two H-rows of the input plane
    o_ref: (1, 1, 1, Wo, C) pooled output row
    """
    m = jnp.maximum(jnp.maximum(x_ref[0, 0, 0], x_ref[0, 0, 1]),
                    jnp.maximum(x_ref[0, 1, 0], x_ref[0, 1, 1]))   # (W, C)
    W, C = m.shape
    Wo = W // 2
    # Pairwise max along W (the sublane dim) via a masked cross-sublane reduce
    # (layout-safe: no strided slicing of the sublane axis).
    wo_idx = lax.broadcasted_iota(jnp.int32, (Wo, W, C), 0)
    w_idx = lax.broadcasted_iota(jnp.int32, (Wo, W, C), 1)
    sel = (w_idx // 2) == wo_idx
    mm = jnp.where(sel, jnp.broadcast_to(m[None], (Wo, W, C)), -jnp.inf)
    o_ref[...] = jnp.max(mm, axis=1)[None, None, None]


# ---------------------------------------------------------------------------
# Wrappers
# ---------------------------------------------------------------------------
def _cparams(n_axes):
    return pltpu.CompilerParams(
        dimension_semantics=("parallel",) * n_axes,
        vmem_limit_bytes=32 * 1024 * 1024)


def conv_block(x_ndhwc, w, b, gamma, beta, *, tm=512):
    """ConvBlock forward.  x: (N, D, H, W, Cin), w: (K, K, K, Cin, Cout)."""
    del b  # conv bias is a no-op before training-mode BN (cancels in the mean)
    N, D, H, W, Cin = x_ndhwc.shape
    K = w.shape[0]
    Cout = w.shape[-1]
    pad = K // 2
    M = N * D * H * W
    Kc = K * K * K * Cin

    # im2col (XLA side); column order (kd, kh, kw, cin) matches w.reshape.
    xp = jnp.pad(x_ndhwc, ((0, 0), (pad, pad), (pad, pad), (pad, pad), (0, 0)))
    cols = []
    for kd in range(K):
        for kh in range(K):
            for kw in range(K):
                cols.append(
                    xp[:, kd:kd + D, kh:kh + H, kw:kw + W, :].reshape(M, Cin))
    patches = jnp.concatenate(cols, axis=1)                 # (M, Kc)

    # Lane/MXU-friendly padding: rows -> multiple of TM, Kc & Cout -> 128.
    TM = min(tm, _round_up(M, SUBLANE))
    Mp = _round_up(M, TM)
    Kp = _round_up(Kc, LANE)
    Cp = _round_up(Cout, LANE)
    nmt = Mp // TM

    patches = jnp.pad(patches, ((0, Mp - M), (0, Kp - Kc))).astype(jnp.bfloat16)
    w2d = jnp.pad(w.reshape(Kc, Cout),
                  ((0, Kp - Kc), (0, Cp - Cout))).astype(jnp.bfloat16)

    # Pass A: tiled matmul + per-tile BN partial sums.
    y, psum, psq = pl.pallas_call(
        conv_stats_kernel,
        out_shape=(jax.ShapeDtypeStruct((Mp, Cp), jnp.float32),
                   jax.ShapeDtypeStruct((nmt * SUBLANE, Cp), jnp.float32),
                   jax.ShapeDtypeStruct((nmt * SUBLANE, Cp), jnp.float32)),
        grid_spec=pltpu.PrefetchScalarGridSpec(
            num_scalar_prefetch=0,
            grid=(nmt,),
            in_specs=[pl.BlockSpec((TM, Kp), lambda m: (m, 0)),
                      pl.BlockSpec((Kp, Cp), lambda m: (0, 0))],  # resident W
            out_specs=[pl.BlockSpec((TM, Cp), lambda m: (m, 0)),
                       pl.BlockSpec((SUBLANE, Cp), lambda m: (m, 0)),
                       pl.BlockSpec((SUBLANE, Cp), lambda m: (m, 0))]),
        compiler_params=_cparams(1),
    )(patches, w2d)

    # Finish BN batch statistics (tiny (Cp,) vectors).  Zero-padded rows and
    # channels contribute exactly zero to the sums, so dividing by the true M
    # gives the biased training-mode statistics.
    tot = jnp.sum(psum, axis=0) / SUBLANE
    tot_sq = jnp.sum(psq, axis=0) / SUBLANE
    mean = tot / M
    var = jnp.maximum(tot_sq / M - mean * mean, 0.0)
    gamma_p = jnp.pad(gamma, (0, Cp - Cout), constant_values=1.0)
    beta_p = jnp.pad(beta, (0, Cp - Cout))
    scale = gamma_p * lax.rsqrt(var + BN_EPS)
    shift = beta_p - mean * scale

    # Pass B: tiled BN-apply + LeakyReLU (pure VPU, lane-dense stores).
    out = pl.pallas_call(
        bn_lrelu_kernel,
        out_shape=jax.ShapeDtypeStruct((Mp, Cp), jnp.float32),
        grid_spec=pltpu.PrefetchScalarGridSpec(
            num_scalar_prefetch=0,
            grid=(nmt,),
            in_specs=[pl.BlockSpec((TM, Cp), lambda m: (m, 0)),
                      pl.BlockSpec((1, Cp), lambda m: (0, 0)),
                      pl.BlockSpec((1, Cp), lambda m: (0, 0))],
            out_specs=pl.BlockSpec((TM, Cp), lambda m: (m, 0))),
        compiler_params=_cparams(1),
    )(y, scale.reshape(1, Cp), shift.reshape(1, Cp))

    return out[:M, :Cout].reshape(N, D, H, W, Cout)


def maxpool3d(x_ndhwc, pool=2):
    """MaxPool3d(kernel=2, stride=2, padding=0) on NDHWC, tiled over (N,Do,Ho)."""
    assert pool == 2, "module uses stride=2; only pool_size=2 is supported"
    N, D, H, W, C = x_ndhwc.shape
    Do, Ho, Wo = D // pool, H // pool, W // pool
    return pl.pallas_call(
        maxpool_kernel,
        out_shape=jax.ShapeDtypeStruct((N, Do, Ho, Wo, C), x_ndhwc.dtype),
        grid_spec=pltpu.PrefetchScalarGridSpec(
            num_scalar_prefetch=0,
            grid=(N, Do, Ho),
            in_specs=[pl.BlockSpec((1, pool, pool, W, C),
                                   lambda n, d, h: (n, d, h, 0, 0))],
            out_specs=pl.BlockSpec((1, 1, 1, Wo, C),
                                   lambda n, d, h: (n, d, h, 0, 0))),
        compiler_params=_cparams(3),
    )(x_ndhwc)


# ---------------------------------------------------------------------------
# EncoderBlock parameters + forward
# ---------------------------------------------------------------------------
def init_encoder_params(key, in_channel, model_depth=4, root_feat_maps=16,
                        num_conv_blocks=2, k=KSIZE):
    params = {}
    cin = in_channel
    for depth in range(model_depth):
        feat = 2 ** (depth + 1) * root_feat_maps
        for i in range(num_conv_blocks):
            key, k1, k2, k3, k4 = jax.random.split(key, 5)
            fan_in = cin * k ** 3
            bound = 1.0 / (fan_in ** 0.5)
            w = jax.random.uniform(k1, (k, k, k, cin, feat), jnp.float32,
                                   -bound, bound)
            b = jax.random.uniform(k2, (feat,), jnp.float32, -bound, bound)
            gamma = 1.0 + 0.1 * jax.random.normal(k3, (feat,), jnp.float32)
            beta = 0.1 * jax.random.normal(k4, (feat,), jnp.float32)
            params[f"conv_{depth}_{i}"] = (w, b, gamma, beta)
            cin, feat = feat, 2 * feat
    return params


def encoder_block_forward(x_ncdhw, params, model_depth=4, pool_size=2,
                          num_conv_blocks=2):
    """Mirrors EncoderBlock.forward.  Input/outputs are NCDHW like PyTorch."""
    x = jnp.transpose(x_ncdhw, (0, 2, 3, 4, 1))   # NCDHW -> NDHWC
    sample_features = {}
    for depth in range(model_depth):
        for i in range(num_conv_blocks):
            w, b, g, bt = params[f"conv_{depth}_{i}"]
            x = conv_block(x, w, b, g, bt)
            if i == num_conv_blocks - 1:
                sample_features[depth] = jnp.transpose(x, (0, 4, 1, 2, 3))
        if depth == model_depth - 1:
            break
        x = maxpool3d(x, pool_size)
    return jnp.transpose(x, (0, 4, 1, 2, 3)), sample_features


# ---------------------------------------------------------------------------
# Pure-JAX f32 reference (for correctness check)
# ---------------------------------------------------------------------------
def _conv_block_ref(x_ndhwc, w, b, g, bt):
    y = jax.lax.conv_general_dilated(
        x_ndhwc, w, (1, 1, 1), "SAME",
        dimension_numbers=("NDHWC", "DHWIO", "NDHWC")) + b
    mean = jnp.mean(y, axis=(0, 1, 2, 3), keepdims=True)
    var = jnp.mean(jnp.square(y - mean), axis=(0, 1, 2, 3), keepdims=True)
    y = (y - mean) * jax.lax.rsqrt(var + BN_EPS) * g + bt
    return jnp.where(y >= 0, y, NEG_SLOPE * y)


def _maxpool_ref(x, pool=2):
    N, D, H, W, C = x.shape
    return x.reshape(N, D // pool, pool, H // pool, pool,
                     W // pool, pool, C).max(axis=(2, 4, 6))


def _encoder_ref(x_ncdhw, params, model_depth, pool_size=2, num_conv_blocks=2):
    x = jnp.transpose(x_ncdhw, (0, 2, 3, 4, 1))
    feats = {}
    for depth in range(model_depth):
        for i in range(num_conv_blocks):
            w, b, g, bt = params[f"conv_{depth}_{i}"]
            x = _conv_block_ref(x, w, b, g, bt)
            if i == num_conv_blocks - 1:
                feats[depth] = jnp.transpose(x, (0, 4, 1, 2, 3))
        if depth == model_depth - 1:
            break
        x = _maxpool_ref(x, pool_size)
    return jnp.transpose(x, (0, 4, 1, 2, 3)), feats


# ---------------------------------------------------------------------------
if __name__ == "__main__":
    key = jax.random.PRNGKey(0)
    kx, kp = jax.random.split(key)

    # small, module-consistent shapes: N=2, Cin=4, D=H=W=8, model_depth=2
    N, Cin, D, H, W = 2, 4, 8, 8, 8
    model_depth = 2

    x = jax.random.normal(kx, (N, Cin, D, H, W), jnp.float32)
    params = init_encoder_params(kp, Cin, model_depth=model_depth)

    out, feats = encoder_block_forward(x, params, model_depth=model_depth)
    out = jax.block_until_ready(out)
    feats = {k: jax.block_until_ready(v) for k, v in feats.items()}

    # sanity-check shapes
    assert out.shape == (N, 128, D // 2, H // 2, W // 2), out.shape
    assert feats[0].shape == (N, 64, D, H, W)
    assert feats[1].shape == (N, 128, D // 2, H // 2, W // 2)

    # values vs a pure-f32 JAX reference; tolerance sized for bf16 MXU inputs
    # (f32 accumulation) across a 4-conv stack.
    ref_out, ref_feats = _encoder_ref(x, params, model_depth)
    assert jnp.allclose(out, ref_out, rtol=3e-2, atol=3e-2)
    for d in ref_feats:
        assert jnp.allclose(feats[d], ref_feats[d], rtol=3e-2, atol=3e-2)

    print("KERNEL_OK")
</pallas_src>

<mosaic_0001>
module attributes {stable_mosaic.version = 11 : i64} {
  func.func @conv_stats_kernel(%arg0: i32, %arg1: memref<512x128xbf16, #tpu.memory_space<vmem>>, %arg2: memref<128x128xbf16, #tpu.memory_space<vmem>>, %arg3: memref<512x128xf32, #tpu.memory_space<vmem>>, %arg4: memref<8x128xf32, #tpu.memory_space<vmem>>, %arg5: memref<8x128xf32, #tpu.memory_space<vmem>>) attributes {dimension_semantics = [#tpu.dimension_semantics<parallel>], iteration_bounds = array<i64: 2>, scalar_prefetch = 0 : i64, scratch_operands = 0 : i64, tpu.core_type = #tpu.core_type<tc>, window_params = [{transform_indices = @transform_0, window_bounds = array<i64: 512, 128>}, {pipeline_mode = #tpu.pipeline_mode<synchronous>, transform_indices = @transform_1, window_bounds = array<i64: 128, 128>}, {transform_indices = @transform_2, window_bounds = array<i64: 512, 128>}, {transform_indices = @transform_3, window_bounds = array<i64: 8, 128>}, {transform_indices = @transform_4, window_bounds = array<i64: 8, 128>}]} {
    %c0 = arith.constant 0 : index
    %c0_0 = arith.constant 0 : index
    %0 = vector.load %arg1[%c0, %c0_0] : memref<512x128xbf16, #tpu.memory_space<vmem>>, vector<512x128xbf16>
    %c0_1 = arith.constant 0 : index
    %c0_2 = arith.constant 0 : index
    %1 = vector.load %arg2[%c0_1, %c0_2] : memref<128x128xbf16, #tpu.memory_space<vmem>>, vector<128x128xbf16>
    %cst = arith.constant dense<0.000000e+00> : vector<512x128xf32>
    %2 = tpu.matmul %0, %1, %cst {dimension_numbers = #tpu.dot_dimension_numbers<[1], [0], [0], [1], [0, 0, 1, 1], [], []>} : vector<512x128xbf16>, vector<128x128xbf16>, vector<512x128xf32> -> vector<512x128xf32>
    %c0_3 = arith.constant 0 : index
    %c0_4 = arith.constant 0 : index
    %3 = vector.load %arg3[%c0_3, %c0_4] : memref<512x128xf32, #tpu.memory_space<vmem>>, vector<512x128xf32>
    tpu.vector_store %arg3[%c0_3, %c0_4], %2 {strides = array<i32>} : memref<512x128xf32, #tpu.memory_space<vmem>>, vector<512x128xf32>,
    %cst_5 = arith.constant dense<0.000000e+00> : vector<128xf32>
    %4 = vector.multi_reduction <add>, %2, %cst_5 [0] : vector<512x128xf32> to vector<128xf32>
    %5 = vector.shape_cast %4 : vector<128xf32> to vector<1x128xf32>
    %6 = arith.mulf %2, %2 : vector<512x128xf32>
    %cst_6 = arith.constant dense<0.000000e+00> : vector<128xf32>
    %7 = vector.multi_reduction <add>, %6, %cst_6 [0] : vector<512x128xf32> to vector<128xf32>
    %8 = vector.shape_cast %7 : vector<128xf32> to vector<1x128xf32>
    %9 = vector.shape_cast %5 : vector<1x128xf32> to vector<1x128xf32>
    %10 = vector.broadcast %9 : vector<1x128xf32> to vector<8x128xf32>
    %c0_7 = arith.constant 0 : index
    %c0_8 = arith.constant 0 : index
    %11 = vector.load %arg4[%c0_7, %c0_8] : memref<8x128xf32, #tpu.memory_space<vmem>>, vector<8x128xf32>
    tpu.vector_store %arg4[%c0_7, %c0_8], %10 {strides = array<i32>} : memref<8x128xf32, #tpu.memory_space<vmem>>, vector<8x128xf32>,
    %12 = vector.shape_cast %8 : vector<1x128xf32> to vector<1x128xf32>
    %13 = vector.broadcast %12 : vector<1x128xf32> to vector<8x128xf32>
    %c0_9 = arith.constant 0 : index
    %c0_10 = arith.constant 0 : index
    %14 = vector.load %arg5[%c0_9, %c0_10] : memref<8x128xf32, #tpu.memory_space<vmem>>, vector<8x128xf32>
    tpu.vector_store %arg5[%c0_9, %c0_10], %13 {strides = array<i32>} : memref<8x128xf32, #tpu.memory_space<vmem>>, vector<8x128xf32>,
    return
  }
  func.func @transform_0(%arg0: i32) -> (i32, i32) {
    %c0_i32 = arith.constant 0 : i32
    %c0_i32_0 = arith.constant 0 : i32
    return %arg0, %c0_i32 : i32, i32
  }
  func.func @transform_1(%arg0: i32) -> (i32, i32) {
    %c0_i32 = arith.constant 0 : i32
    %c0_i32_0 = arith.constant 0 : i32
    %c0_i32_1 = arith.constant 0 : i32
    return %c0_i32, %c0_i32_0 : i32, i32
  }
  func.func @transform_2(%arg0: i32) -> (i32, i32) {
    %c0_i32 = arith.constant 0 : i32
    %c0_i32_0 = arith.constant 0 : i32
    return %arg0, %c0_i32 : i32, i32
  }
  func.func @transform_3(%arg0: i32) -> (i32, i32) {
    %c0_i32 = arith.constant 0 : i32
    %c0_i32_0 = arith.constant 0 : i32
    return %arg0, %c0_i32 : i32, i32
  }
  func.func @transform_4(%arg0: i32) -> (i32, i32) {
    %c0_i32 = arith.constant 0 : i32
    %c0_i32_0 = arith.constant 0 : i32
    return %arg0, %c0_i32 : i32, i32
  }
}

</mosaic_0001>

<bundles_post_ra>
// kernel: tpu_custom_call.1
= control target key start
LH: loop header
LB: loop body
LE: loop exit
PB: predicated region body
PF: predicated region fallthrough
CT: control target
= control target key end

     0   :  { %10 = vsyncpa [#allocation3], 0  ;;  %s2430_s0 = inlined_call_operand.hbm [shape: bf16[1024,128], index: 0, kind: input, shape index: {}]   ;;  %s2431_s1 = inlined_call_operand.hbm [shape: bf16[128,128], index: 1, kind: input, shape index: {}]   ;;  %s2432_s2 = inlined_call_operand.hbm [shape: f32[1024,128], index: 2, kind: output, shape index: {0}]   ;;  %s2433_s3 = inlined_call_operand.hbm [shape: f32[16,128], index: 3, kind: output, shape index: {1}]   ;;  %s2434_s4 = inlined_call_operand.hbm [shape: f32[16,128], index: 4, kind: output, shape index: {2}]  }
   0x1   :  { %12 = vsyncpa [#allocation3 + $0x1], 0 }
   0x2   :  { %13 = vsyncpa [#allocation6], 0 }
   0x3   :  { %14 = vsyncpa [#allocation4], 0 }
   0x4   :  { %16 = vsyncpa [#allocation4 + $0x1], 0 }
   0x5   :  { %17 = vsyncpa [#allocation9], 0 }
   0x6   :  { %19 = vsyncpa [#allocation9 + $0x1], 0  ;;  %s1858_s15 = smov 0   ;;  %s1860_s16 = smov 0  }
   0x7   :  { %s1862_s17 = smov 0   ;;  %s1864_s18 = smov 0  }
   0x8 LB: > { %s1879_s19 = sadd.s32 4294967295, %s1822_s18   ;;  %s1323_s20 = sadd.s32 4294967294, %s1822_s18   ;;  %s1822_s18 = sphi %s1864_s18, %s2454_s18   ;;  %s1818_s17 = sphi %s1862_s17, %s2453_s17   ;;  %s1814_s16 = sphi %s1860_s16, %s2452_s16   ;;  %s1810_s15 = sphi %s1858_s15, %s2451_s15  }
   0x9   : > { %p45_p0 = scmp.ne.s32.totalorder %s1814_s16, %s1810_s15  ;;  %p2435_p1 = scmp.eq.s32.totalorder %s1879_s19, 0 }
   0xa   : > { %p96_p3 = scmp.eq.s32.totalorder %s1323_s20, 1  ;;  %p1324_p5 = scmp.ge.s32.totalorder %s1822_s18, 1 }
   0xb   : > { %p1890_p4 = por %p2435_p1, %p45_p0  ;;  %p155_p7 = scmp.lt.s32.totalorder %s1822_s18, 3 }
   0xc   : > { %p1895_p6 = por %p96_p3, %p45_p0  ;;  %s1824_s24 = smov [#allocation5]  }
   0xd   : > { %s2438_s21 = scalar_select %p1890_p4, 1, 0 }
   0xe   : > { %s2439_s22 = scalar_select %p1895_p6, 1, 0 }
   0xf   : > { %p1900_p8 = pnand %p1324_p5, %p155_p7  ;;  %s167_s25 = sshll.u32 %s1824_s24, 4  ;;  %s1904_s25 = int_to_ptr.vmem [resolvable:$true] %s167_s25 }
  0x10   : > { %s1916_s27 = sadd.s32 1, %s1822_s18   ;;  %s32_s28 = sadd.s32 1, %s1818_s17 }
  0x11   : > { %s2440_s23 = scalar_select %p1900_p8, 1, 0 }
  0x12   : > { %p1535_p9 = pneg %p1900_p8  ;;  %s29_s29 = ssub.s32 %s1822_s18, %s1916_s27 }
  0x13   : > { %s1634_s6 = scalar_lea.hbm %s2431_s1, 1024 }
  0x14   : > { %p1911_p11 = pnand %p1535_p9, %p2435_p1  ;;  %p1635_p12 = scmp.ne.s32.totalorder %s2431_s1, %s1634_s6 }
  0x15   : > { %p1641_p5 = scmp.lt.u32.totalorder %s1634_s6, %s2431_s1 }
  0x16   : > { %p1636_p13 = pneg %p1911_p11 }
  0x18   : > { %p1637_p0 = pnand %p1636_p13, %p1635_p12 }
  0x1a   : > { %p1638_p3 = pneg %p1637_p0 }
  0x1c   : > { %p1643_p7 = pnand %p1641_p5, %p1638_p3 }
  0x1e   : > { %1646 = shalt.err (!%p1643_p7)
}
  0x1f   : > { %s1647_s11 = scalar_lea.vmem %s1904_s25, 1024  ;;  %p1655_p2 = scmp.lt.s32.totalorder %s1904_s25, %s1904_s25 }
  0x20   : > { %p1648_p9 = scmp.ne.s32.totalorder %s1904_s25, %s1647_s11  ;;  %p1656_p6 = scmp.lt.s32.totalorder %s1647_s11, %s1647_s11 }
  0x22   : > { %p1650_p10 = pnand %p1648_p9, %p1636_p13  ;;  %p1657_p4 = por %p1656_p6, %p1655_p2 }
  0x24   : > { %p1651_p1 = pneg %p1650_p10 }
  0x26   : > { %p1658_p8 = pnand %p1657_p4, %p1651_p1 }
  0x28   : > { %1661 = shalt.err (!%p1658_p8)
}
  0x29   : > { %s1825_s12 = smov 64   ;;  %s1826_s13 = smov 4  }
  0x2a   : > { %1538 = dma.hbm_to_vmem [thread:$0]  (!%p1911_p11), %s2431_s1, 1024, %s1904_s25, [#allocation6], %s1825_s12, %s1825_s12, %s1826_s13  }
  0x2b   : > { %p30_p1 = scmp.eq.s32.totalorder %s29_s29, 0  ;;  %p39_p2 = scmp.ne.s32.totalorder %s1818_s17, %s1814_s16 }
  0x2c   : > { %p40_p4 = scmp.eq.s32.totalorder %s1822_s18, 0  ;;  %p1554_p6 = scmp.lt.s32.totalorder %s1822_s18, 2 }
  0x2d   : > { %s1950_s30 = scalar_select %p30_p1, %s1818_s17, %s32_s28  }
  0x2e   : > { %p41_p8 = por %p40_p4, %p39_p2  ;;  %p2442_p10 = scmp.eq.s32.totalorder %s1879_s19, 1 }
  0x2f   : > { %s181_s26 = sand.u32 1, %s1818_s17   ;;  %s1385_s6 = sshll.u32 %s1822_s18, 12 }
  0x30   : > { %p1954_p12 = por %p2442_p10, %p39_p2  ;;  %s1327_s7 = sshll.u32 %s181_s26, 8 }
  0x31   : > { %s1963_s10 = scalar_lea.hbm %s2430_s0, %s1385_s6  ;;  %s185_s25 = scalar_lea.vmem [#allocation2], %s1327_s7 }
  0x32   : > { %s192_s28 = sshll.u32 %s185_s25, 4  ;;  %p1965_p11 = pnand %p1554_p6, %p41_p8  ;;  %s1969_s28 = int_to_ptr.vmem [resolvable:$true] %s192_s28 }
  0x33   : > { %s1971_s11 = scalar_lea.sflag [#allocation3], %s181_s26  ;;  %s1662_s14 = scalar_lea.hbm %s1963_s10, 4096 }
  0x34   : > { %p1663_p13 = scmp.ne.s32.totalorder %s1963_s10, %s1662_s14  ;;  %p1664_p0 = pneg %p1965_p11 }
  0x35   : > { %s1667_s7 = scalar_lea.hbm %s2430_s0, 8192  ;;  %p1668_p7 = scmp.lt.u32.totalorder %s1963_s10, %s2430_s0 }
  0x36   : > { %p1665_p3 = pnand %p1664_p0, %p1663_p13  ;;  %p1669_p9 = scmp.lt.u32.totalorder %s1667_s7, %s1662_s14 }
  0x37   : > { %p1671_p2 = scmp.lt.u32.totalorder %s1662_s14, %s1963_s10 }
  0x38   : > { %p1666_p5 = pneg %p1665_p3  ;;  %p1670_p1 = por %p1669_p9, %p1668_p7 }
  0x3a   : > { %p1672_p4 = por %p1671_p2, %p1670_p1 }
  0x3c   : > { %p1673_p6 = pnand %p1672_p4, %p1666_p5 }
  0x3e   : > { %1676 = shalt.err (!%p1673_p6)
}
  0x3f   : > { %s1677_s26 = scalar_lea.vmem %s1969_s28, 4096  ;;  %s1827_s25 = smov [#allocation2]  }
  0x40   : > { %p1678_p8 = scmp.ne.s32.totalorder %s1969_s28, %s1677_s26  ;;  %s1682_s24 = sshll.u32 %s1827_s25, 4  ;;  %s1683_s24 = int_to_ptr.vmem [resolvable:$false] %s1682_s24 }
  0x41   : > { %s1684_s6 = scalar_lea.vmem %s1683_s24, 8192  ;;  %p1685_p3 = scmp.lt.s32.totalorder %s1969_s28, %s1683_s24 }
  0x42   : > { %p1680_p10 = pnand %p1678_p8, %p1664_p0  ;;  %p1686_p7 = scmp.lt.s32.totalorder %s1684_s6, %s1677_s26 }
  0x44   : > { %p1681_p13 = pneg %p1680_p10  ;;  %p1687_p9 = por %p1686_p7, %p1685_p3 }
  0x46   : > { %p1688_p1 = pnand %p1687_p9, %p1681_p13 }
  0x48   : > { %1691 = shalt.err (!%p1688_p1)
}
  0x49   : > { %1542 = dma.hbm_to_vmem [thread:$0]  (!%p1965_p11), %s1963_s10, 4096, %s1969_s28, %s1971_s11, %s1825_s12, %s1825_s12, %s1826_s13  }
  0x4a   : > { %p2445_p0 = scmp.ne.s32.totalorder %s2440_s23, 0 }
  0x4b   : > { %s2005_s14 = sand.u32 (!%p2445_p0), 1, %s1814_s16   ;;  %p2446_p5 = scmp.ne.s32.totalorder (!%p2445_p0), %s2438_s21, 0 }
  0x4c   : > { %204 = sbr.rel (%p2445_p0) target bundleno = 520 (0x208), region = 28  ;;  %s1331_s7 = sshll.u32 (!%p2445_p0), %s2005_s14, 8 }
  0x4d   : > { %s207_s8 = scalar_lea.sflag (!%p2445_p0), [#allocation3], %s2005_s14  ;;  %s2009_s9 = scalar_lea.vmem (!%p2445_p0), [#allocation2], %s1331_s7 }
  0x53   : > { %1793 = dma.done.wait (%p2446_p5), %s207_s8, 4096  }
  0x54   : > { %1795 = vsyncadd (%p2446_p5), %s207_s8, 4294963200  ;;  %p2447_p11 = scmp.eq.s32.totalorder %s1879_s19, 0 }
  0x56   : > { %1797 = dma.done.wait (%p2447_p11), [#allocation6], 1024   ;;  %p2448_p2 = pmov %p2447_p11 }
  0x57   : > { %v1594_v0 = vld [vmem:[#allocation5] sm:$0xff]   ;;  %v1595_v1 = vld [vmem:[#allocation5 + $0x8] sm:$0xff]   ;;  %v1596_v2 = vld [vmem:[#allocation5 + $0x10] sm:$0xff]   ;;  %s1333_s21 = sshll.u32 %s2005_s14, 9  ;;  %s1386_s12 = sshll.u32 %s1879_s19, 13 }
  0x58   : > { %1799 = vsyncadd (%p2448_p2), [#allocation6], 4294966272  ;;  %1427 = vmatprep.subr.bf16.mxu0 %v1594_v0  ;;  %1507 = vmatprep.subr.bf16.mxu1 %v1594_v0  ;;  %v1597_v3 = vld [vmem:[#allocation5 + $0x18] sm:$0xff]   ;;  %v1602_v4 = vld [vmem:[%s2009_s9] sm:$0xff]   ;;  %s2054_s23 = scalar_lea.vmem [#allocation7], %s1333_s21  ;;  %s2206_s29 = scalar_lea.hbm %s2432_s2, %s1386_s12 }
  0x59   : > { %1428 = vmatpush3.bf16.msra.mxu0 %v1594_v0  ;;  %1515 = vmatpush3.bf16.msra.mxu1 %v1594_v0  ;;  %v1598_v5 = vld [vmem:[#allocation5 + $0x20] sm:$0xff]   ;;  %v1599_v6 = vld [vmem:[#allocation5 + $0x28] sm:$0xff]   ;;  %v1600_v7 = vld [vmem:[#allocation5 + $0x30] sm:$0xff]   ;;  %s1153_s13 = sshll.u32 %s2054_s23, 4  ;;  %s1130_s11 = scalar_lea.sflag [#allocation4], %s2005_s14  ;;  %s2208_s13 = int_to_ptr.vmem [resolvable:$true] %s1153_s13 }
  0x5a   : > { %1429 = vmatprep.subr.bf16.mxu0 %v1595_v1  ;;  %1508 = vmatprep.subr.bf16.mxu1 %v1595_v1  ;;  %v1601_v8 = vld [vmem:[#allocation5 + $0x38] sm:$0xff]   ;;  %v1618_v9 = vld [vmem:[%s2009_s9 + $0x80] sm:$0xff]   ;;  %v1603_v10 = vld [vmem:[%s2009_s9 + $0x8] sm:$0xff]   ;;  %s1692_s26 = scalar_lea.vmem %s2208_s13, 8192  ;;  %s1828_s25 = smov [#allocation7]  }
  0x5b   : > { %1443 = vmatprep.mubr.bf16.mxu0 %v1602_v4  ;;  %1475 = vmatprep.mubr.bf16.mxu1 %v1618_v9  ;;  %v1604_v11 = vld [vmem:[%s2009_s9 + $0x10] sm:$0xff]   ;;  %v1619_v12 = vld [vmem:[%s2009_s9 + $0x88] sm:$0xff]   ;;  %v1605_v14 = vld [vmem:[%s2009_s9 + $0x18] sm:$0xff]   ;;  %p1693_p4 = scmp.ne.s32.totalorder %s2208_s13, %s1692_s26  ;;  %s1696_s24 = sshll.u32 %s1828_s25, 4  ;;  %s1697_s24 = int_to_ptr.vmem [resolvable:$false] %s1696_s24 }
  0x5c   : > { %v1620_v13 = vld [vmem:[%s2009_s9 + $0x90] sm:$0xff]   ;;  %v1606_v15 = vld [vmem:[%s2009_s9 + $0x20] sm:$0xff]   ;;  %v1621_v16 = vld [vmem:[%s2009_s9 + $0x98] sm:$0xff]   ;;  %s1698_s6 = scalar_lea.vmem %s1697_s24, 16384  ;;  %p1699_p10 = scmp.lt.s32.totalorder %s2208_s13, %s1697_s24 }
  0x5d   : > { %1430 = vmatpush3.bf16.msra.mxu0 %v1595_v1  ;;  %1516 = vmatpush3.bf16.msra.mxu1 %v1595_v1  ;;  %v1622_v17 = vld [vmem:[%s2009_s9 + $0xa0] sm:$0xff]   ;;  %v1607_v18 = vld [vmem:[%s2009_s9 + $0x28] sm:$0xff]   ;;  %v1608_v20 = vld [vmem:[%s2009_s9 + $0x30] sm:$0xff]   ;;  %p1694_p6 = pnand %p1693_p4, %p1954_p12  ;;  %p1700_p13 = scmp.lt.s32.totalorder %s1698_s6, %s1692_s26 }
  0x5e   : > { %1431 = vmatprep.subr.bf16.mxu0 %v1596_v2  ;;  %1509 = vmatprep.subr.bf16.mxu1 %v1596_v2  ;;  %v1623_v19 = vld [vmem:[%s2009_s9 + $0xa8] sm:$0xff]   ;;  %v1624_v21 = vld [vmem:[%s2009_s9 + $0xb0] sm:$0xff]   ;;  %v1609_v22 = vld [vmem:[%s2009_s9 + $0x38] sm:$0xff]  }
  0x5f   : > { %v1625_v23 = vld [vmem:[%s2009_s9 + $0xb8] sm:$0xff]   ;;  %v1610_v24 = vld [vmem:[%s2009_s9 + $0x40] sm:$0xff]   ;;  %v1611_v26 = vld [vmem:[%s2009_s9 + $0x48] sm:$0xff]   ;;  %p1695_p8 = pneg %p1694_p6  ;;  %p1701_p3 = por %p1700_p13, %p1699_p10 }
  0x60   : > { %v1626_v25 = vld [vmem:[%s2009_s9 + $0xc0] sm:$0xff]   ;;  %v1627_v27 = vld [vmem:[%s2009_s9 + $0xc8] sm:$0xff]   ;;  %v1612_v28 = vld [vmem:[%s2009_s9 + $0x50] sm:$0xff]  }
  0x61   : > { %1432 = vmatpush3.bf16.msra.mxu0 %v1596_v2  ;;  %1517 = vmatpush3.bf16.msra.mxu1 %v1596_v2  ;;  %v1628_v29 = vld [vmem:[%s2009_s9 + $0xd0] sm:$0xff]   ;;  %v1613_v30 = vld [vmem:[%s2009_s9 + $0x58] sm:$0xff]   ;;  %v1614_v32 = vld [vmem:[%s2009_s9 + $0x60] sm:$0xff]   ;;  %p1702_p7 = pnand %p1701_p3, %p1695_p8 }
  0x62   : > { %1433 = vmatprep.subr.bf16.mxu0 %v1597_v3  ;;  %1510 = vmatprep.subr.bf16.mxu1 %v1597_v3  ;;  %v1629_v31 = vld [vmem:[%s2009_s9 + $0xd8] sm:$0xff]   ;;  %v1630_v33 = vld [vmem:[%s2009_s9 + $0xe0] sm:$0xff]   ;;  %v1615_v34 = vld [vmem:[%s2009_s9 + $0x68] sm:$0xff]  }
  0x63   : > { %v1631_v35 = vld [vmem:[%s2009_s9 + $0xe8] sm:$0xff]   ;;  %v1616_v36 = vld [vmem:[%s2009_s9 + $0x70] sm:$0xff]   ;;  %v1617_v38 = vld [vmem:[%s2009_s9 + $0x78] sm:$0xff]  }
  0x64   : > { %v1632_v37 = vld [vmem:[%s2009_s9 + $0xf0] sm:$0xff]   ;;  %v1633_v39 = vld [vmem:[%s2009_s9 + $0xf8] sm:$0xff]  }
  0x65   : > { %1434 = vmatpush3.bf16.msra.mxu0 %v1597_v3  ;;  %1518 = vmatpush3.bf16.msra.mxu1 %v1597_v3 }
  0x66   : > { %1435 = vmatprep.subr.bf16.mxu0 %v1598_v5  ;;  %1511 = vmatprep.subr.bf16.mxu1 %v1598_v5 }
  0x69   : > { %1436 = vmatpush3.bf16.msra.mxu0 %v1598_v5  ;;  %1519 = vmatpush3.bf16.msra.mxu1 %v1598_v5 }
  0x6a   : > { %1437 = vmatprep.subr.bf16.mxu0 %v1599_v6  ;;  %1512 = vmatprep.subr.bf16.mxu1 %v1599_v6 }
  0x6d   : > { %1438 = vmatpush3.bf16.msra.mxu0 %v1599_v6  ;;  %1520 = vmatpush3.bf16.msra.mxu1 %v1599_v6 }
  0x6e   : > { %1439 = vmatprep.subr.bf16.mxu0 %v1600_v7  ;;  %1513 = vmatprep.subr.bf16.mxu1 %v1600_v7 }
  0x71   : > { %1440 = vmatpush3.bf16.msra.mxu0 %v1600_v7  ;;  %1521 = vmatpush3.bf16.msra.mxu1 %v1600_v7 }
  0x72   : > { %1441 = vmatprep.subr.bf16.mxu0 %v1601_v8  ;;  %1514 = vmatprep.subr.bf16.mxu1 %v1601_v8 }
  0x75   : > { %1442 = vmatpush3.bf16.msra.mxu0 %v1601_v8  ;;  %1522 = vmatpush3.bf16.msra.mxu1 %v1601_v8 }
  0x78   : > { %1444 = vmatmul.mubr.bf16.vlgmr.msra.gmra.mrb[0].mxu0 %v1603_v10  ;;  %1476 = vmatmul.mubr.bf16.vlgmr.msra.gmra.mrb[0].mxu1 %v1619_v12 }
  0x79   : > { %1447 = vmatprep.mubr.bf16.mxu0 %v1604_v11  ;;  %1479 = vmatprep.mubr.bf16.mxu1 %v1620_v13 }
  0x80   : > { %1448 = vmatmul.mubr.bf16.gmra.mrb[4].mxu0 %v1605_v14  ;;  %1480 = vmatmul.mubr.bf16.gmra.mrb[4].mxu1 %v1621_v16 }
  0x81   : > { %1451 = vmatprep.mubr.bf16.mxu0 %v1606_v15  ;;  %1483 = vmatprep.mubr.bf16.mxu1 %v1622_v17 }
  0x88   : > { %1452 = vmatmul.mubr.bf16.gmra.mrb[8].mxu0 %v1607_v18  ;;  %1484 = vmatmul.mubr.bf16.gmra.mrb[8].mxu1 %v1623_v19 }
  0x89   : > { %1455 = vmatprep.mubr.bf16.mxu0 %v1608_v20  ;;  %1487 = vmatprep.mubr.bf16.mxu1 %v1624_v21 }
  0x90   : > { %1456 = vmatmul.mubr.bf16.gmra.mrb[12].mxu0 %v1609_v22  ;;  %1488 = vmatmul.mubr.bf16.gmra.mrb[12].mxu1 %v1625_v23 }
  0x91   : > { %1459 = vmatprep.mubr.bf16.mxu0 %v1610_v24  ;;  %1491 = vmatprep.mubr.bf16.mxu1 %v1626_v25 }
  0x98   : > { %1460 = vmatmul.mubr.bf16.gmra.mrb[16].mxu0 %v1611_v26  ;;  %1492 = vmatmul.mubr.bf16.gmra.mrb[16].mxu1 %v1627_v27 }
  0x99   : > { %1463 = vmatprep.mubr.bf16.mxu0 %v1612_v28  ;;  %1495 = vmatprep.mubr.bf16.mxu1 %v1628_v29 }
  0xa0   : > { %1464 = vmatmul.mubr.bf16.gmra.mrb[20].mxu0 %v1613_v30  ;;  %1496 = vmatmul.mubr.bf16.gmra.mrb[20].mxu1 %v1629_v31 }
  0xa1   : > { %1467 = vmatprep.mubr.bf16.mxu0 %v1614_v32  ;;  %1499 = vmatprep.mubr.bf16.mxu1 %v1630_v33 }
  0xa8   : > { %1468 = vmatmul.mubr.bf16.gmra.mrb[24].mxu0 %v1615_v34  ;;  %1500 = vmatmul.mubr.bf16.gmra.mrb[24].mxu1 %v1631_v35 }
  0xa9   : > { %1471 = vmatprep.mubr.bf16.mxu0 %v1616_v36  ;;  %1503 = vmatprep.mubr.bf16.mxu1 %v1632_v37 }
  0xb0   : > { %1472 = vmatmul.mubr.bf16.gmra.mrb[28].mxu0 %v1617_v38  ;;  %1504 = vmatmul.mubr.bf16.gmra.mrb[28].mxu1 %v1633_v39 }
 0x14b   : > { %v1445_v40 = vpop.f32.mrb[0].mxu0  ;;  %v2052_v41 = vpop.f32.mrb[0].mxu1 }
 0x14c   : > { %863 = vst [vmem:[%s2054_s23 + $0x10] sm:$0xff] %v1445_v40  ;;  %v606_v42 = vpop.f32.mrb[1].mxu0  ;;  %895 = vst [vmem:[%s2054_s23 + $0x110] sm:$0xff] %v2052_v41  ;;  %v2059_v43 = vpop.f32.mrb[1].mxu1  ;;  %v996_v51 = vmul.f32 %v1445_v40, %v1445_v40 }
 0x14d   : > { %861 = vst [vmem:[%s2054_s23] sm:$0xff] %v606_v42  ;;  %v1446_v44 = vpop.f32.mrb[2].mxu0  ;;  %893 = vst [vmem:[%s2054_s23 + $0x100] sm:$0xff] %v2059_v43  ;;  %v2064_v45 = vpop.f32.mrb[2].mxu1  ;;  %v994_v48 = vmul.f32 %v606_v42, %v606_v42 }
 0x14e   : > { %864 = vst [vmem:[%s2054_s23 + $0x18] sm:$0xff] %v1446_v44  ;;  %v609_v46 = vpop.f32.mrb[3].mxu0  ;;  %896 = vst [vmem:[%s2054_s23 + $0x118] sm:$0xff] %v2064_v45  ;;  %v2069_v47 = vpop.f32.mrb[3].mxu1  ;;  %v997_v54 = vmul.f32 %v1446_v44, %v1446_v44 }
 0x14f   : > { %862 = vst [vmem:[%s2054_s23 + $0x8] sm:$0xff] %v609_v46  ;;  %v925_v49 = vadd.f32 %v609_v46, %v606_v42  ;;  %v995_v50 = vmul.f32 %v609_v46, %v609_v46  ;;  %894 = vst [vmem:[%s2054_s23 + $0x108] sm:$0xff] %v2069_v47 }
 0x151   : > { %v926_v52 = vadd.f32 %v1445_v40, %v925_v49  ;;  %v1058_v53 = vadd.f32 %v995_v50, %v994_v48 }
 0x153   : > { %v1059_v55 = vadd.f32 %v1058_v53, %v996_v51  ;;  %v1449_v56 = vpop.f32.mrb[4].mxu0  ;;  %v927_v57 = vadd.f32 %v1446_v44, %v926_v52  ;;  %v2074_v58 = vpop.f32.mrb[4].mxu1 }
 0x154   : > { %867 = vst [vmem:[%s2054_s23 + $0x30] sm:$0xff] %v1449_v56  ;;  %v622_v59 = vpop.f32.mrb[5].mxu0  ;;  %899 = vst [vmem:[%s2054_s23 + $0x130] sm:$0xff] %v2074_v58  ;;  %v2079_v60 = vpop.f32.mrb[5].mxu1  ;;  %v1000_v7 = vmul.f32 %v1449_v56, %v1449_v56 }
 0x155   : > { %865 = vst [vmem:[%s2054_s23 + $0x20] sm:$0xff] %v622_v59  ;;  %v928_v61 = vadd.f32 %v927_v57, %v622_v59  ;;  %v998_v62 = vmul.f32 %v622_v59, %v622_v59  ;;  %v1060_v63 = vadd.f32 %v1059_v55, %v997_v54  ;;  %v1450_v0 = vpop.f32.mrb[6].mxu0  ;;  %897 = vst [vmem:[%s2054_s23 + $0x120] sm:$0xff] %v2079_v60  ;;  %v2084_v1 = vpop.f32.mrb[6].mxu1 }
 0x156   : > { %868 = vst [vmem:[%s2054_s23 + $0x38] sm:$0xff] %v1450_v0  ;;  %v625_v2 = vpop.f32.mrb[7].mxu0  ;;  %900 = vst [vmem:[%s2054_s23 + $0x138] sm:$0xff] %v2084_v1  ;;  %v2089_v3 = vpop.f32.mrb[7].mxu1  ;;  %v1001_v10 = vmul.f32 %v1450_v0, %v1450_v0 }
 0x157   : > { %v1061_v4 = vadd.f32 %v1060_v63, %v998_v62  ;;  %866 = vst [vmem:[%s2054_s23 + $0x28] sm:$0xff] %v625_v2  ;;  %v929_v5 = vadd.f32 %v928_v61, %v625_v2  ;;  %v999_v6 = vmul.f32 %v625_v2, %v625_v2  ;;  %898 = vst [vmem:[%s2054_s23 + $0x128] sm:$0xff] %v2089_v3 }
 0x159   : > { %v930_v8 = vadd.f32 %v1449_v56, %v929_v5  ;;  %v1062_v9 = vadd.f32 %v1061_v4, %v999_v6 }
 0x15b   : > { %v1063_v11 = vadd.f32 %v1062_v9, %v1000_v7  ;;  %v1453_v12 = vpop.f32.mrb[8].mxu0  ;;  %v931_v13 = vadd.f32 %v1450_v0, %v930_v8  ;;  %v2094_v14 = vpop.f32.mrb[8].mxu1 }
 0x15c   : > { %871 = vst [vmem:[%s2054_s23 + $0x50] sm:$0xff] %v1453_v12  ;;  %v638_v15 = vpop.f32.mrb[9].mxu0  ;;  %903 = vst [vmem:[%s2054_s23 + $0x150] sm:$0xff] %v2094_v14  ;;  %v2099_v16 = vpop.f32.mrb[9].mxu1  ;;  %v1004_v27 = vmul.f32 %v1453_v12, %v1453_v12 }
 0x15d   : > { %869 = vst [vmem:[%s2054_s23 + $0x40] sm:$0xff] %v638_v15  ;;  %v932_v17 = vadd.f32 %v931_v13, %v638_v15  ;;  %v1002_v18 = vmul.f32 %v638_v15, %v638_v15  ;;  %v1064_v19 = vadd.f32 %v1063_v11, %v1001_v10  ;;  %v1454_v20 = vpop.f32.mrb[10].mxu0  ;;  %901 = vst [vmem:[%s2054_s23 + $0x140] sm:$0xff] %v2099_v16  ;;  %v2104_v21 = vpop.f32.mrb[10].mxu1 }
 0x15e   : > { %872 = vst [vmem:[%s2054_s23 + $0x58] sm:$0xff] %v1454_v20  ;;  %v641_v22 = vpop.f32.mrb[11].mxu0  ;;  %904 = vst [vmem:[%s2054_s23 + $0x158] sm:$0xff] %v2104_v21  ;;  %v2109_v23 = vpop.f32.mrb[11].mxu1  ;;  %v1005_v30 = vmul.f32 %v1454_v20, %v1454_v20 }
 0x15f   : > { %v1065_v24 = vadd.f32 %v1064_v19, %v1002_v18  ;;  %870 = vst [vmem:[%s2054_s23 + $0x48] sm:$0xff] %v641_v22  ;;  %v933_v25 = vadd.f32 %v932_v17, %v641_v22  ;;  %v1003_v26 = vmul.f32 %v641_v22, %v641_v22  ;;  %902 = vst [vmem:[%s2054_s23 + $0x148] sm:$0xff] %v2109_v23 }
 0x161   : > { %v934_v28 = vadd.f32 %v1453_v12, %v933_v25  ;;  %v1066_v29 = vadd.f32 %v1065_v24, %v1003_v26 }
 0x163   : > { %v1067_v31 = vadd.f32 %v1066_v29, %v1004_v27  ;;  %v1457_v32 = vpop.f32.mrb[12].mxu0  ;;  %v935_v33 = vadd.f32 %v1454_v20, %v934_v28  ;;  %v2114_v34 = vpop.f32.mrb[12].mxu1 }
 0x164   : > { %875 = vst [vmem:[%s2054_s23 + $0x70] sm:$0xff] %v1457_v32  ;;  %v654_v35 = vpop.f32.mrb[13].mxu0  ;;  %907 = vst [vmem:[%s2054_s23 + $0x170] sm:$0xff] %v2114_v34  ;;  %v2119_v36 = vpop.f32.mrb[13].mxu1  ;;  %v1008_v51 = vmul.f32 %v1457_v32, %v1457_v32 }
 0x165   : > { %873 = vst [vmem:[%s2054_s23 + $0x60] sm:$0xff] %v654_v35  ;;  %v936_v37 = vadd.f32 %v935_v33, %v654_v35  ;;  %v1006_v38 = vmul.f32 %v654_v35, %v654_v35  ;;  %v1068_v39 = vadd.f32 %v1067_v31, %v1005_v30  ;;  %v1458_v40 = vpop.f32.mrb[14].mxu0  ;;  %905 = vst [vmem:[%s2054_s23 + $0x160] sm:$0xff] %v2119_v36  ;;  %v2124_v42 = vpop.f32.mrb[14].mxu1 }
 0x166   : > { %876 = vst [vmem:[%s2054_s23 + $0x78] sm:$0xff] %v1458_v40  ;;  %v657_v44 = vpop.f32.mrb[15].mxu0  ;;  %908 = vst [vmem:[%s2054_s23 + $0x178] sm:$0xff] %v2124_v42  ;;  %v2129_v46 = vpop.f32.mrb[15].mxu1  ;;  %v1009_v54 = vmul.f32 %v1458_v40, %v1458_v40 }
 0x167   : > { %v1069_v48 = vadd.f32 %v1068_v39, %v1006_v38  ;;  %874 = vst [vmem:[%s2054_s23 + $0x68] sm:$0xff] %v657_v44  ;;  %v937_v49 = vadd.f32 %v936_v37, %v657_v44  ;;  %v1007_v50 = vmul.f32 %v657_v44, %v657_v44  ;;  %906 = vst [vmem:[%s2054_s23 + $0x168] sm:$0xff] %v2129_v46 }
 0x169   : > { %v938_v52 = vadd.f32 %v1457_v32, %v937_v49  ;;  %v1070_v53 = vadd.f32 %v1069_v48, %v1007_v50 }
 0x16b   : > { %v1071_v55 = vadd.f32 %v1070_v53, %v1008_v51  ;;  %v1461_v56 = vpop.f32.mrb[16].mxu0  ;;  %v939_v57 = vadd.f32 %v1458_v40, %v938_v52  ;;  %v2134_v59 = vpop.f32.mrb[16].mxu1 }
 0x16c   : > { %879 = vst [vmem:[%s2054_s23 + $0x90] sm:$0xff] %v1461_v56  ;;  %v670_v61 = vpop.f32.mrb[17].mxu0  ;;  %911 = vst [vmem:[%s2054_s23 + $0x190] sm:$0xff] %v2134_v59  ;;  %v2139_v62 = vpop.f32.mrb[17].mxu1  ;;  %v1012_v11 = vmul.f32 %v1461_v56, %v1461_v56 }
 0x16d   : > { %877 = vst [vmem:[%s2054_s23 + $0x80] sm:$0xff] %v670_v61  ;;  %v940_v63 = vadd.f32 %v939_v57, %v670_v61  ;;  %v1010_v0 = vmul.f32 %v670_v61, %v670_v61  ;;  %v1072_v2 = vadd.f32 %v1071_v55, %v1009_v54  ;;  %v1462_v4 = vpop.f32.mrb[18].mxu0  ;;  %909 = vst [vmem:[%s2054_s23 + $0x180] sm:$0xff] %v2139_v62  ;;  %v2144_v5 = vpop.f32.mrb[18].mxu1 }
 0x16e   : > { %880 = vst [vmem:[%s2054_s23 + $0x98] sm:$0xff] %v1462_v4  ;;  %v673_v6 = vpop.f32.mrb[19].mxu0  ;;  %912 = vst [vmem:[%s2054_s23 + $0x198] sm:$0xff] %v2144_v5  ;;  %v2149_v7 = vpop.f32.mrb[19].mxu1  ;;  %v1013_v15 = vmul.f32 %v1462_v4, %v1462_v4 }
 0x16f   : > { %v1073_v8 = vadd.f32 %v1072_v2, %v1010_v0  ;;  %878 = vst [vmem:[%s2054_s23 + $0x88] sm:$0xff] %v673_v6  ;;  %v941_v9 = vadd.f32 %v940_v63, %v673_v6  ;;  %v1011_v10 = vmul.f32 %v673_v6, %v673_v6  ;;  %910 = vst [vmem:[%s2054_s23 + $0x188] sm:$0xff] %v2149_v7 }
 0x171   : > { %v942_v12 = vadd.f32 %v1461_v56, %v941_v9  ;;  %v1074_v13 = vadd.f32 %v1073_v8, %v1011_v10 }
 0x173   : > { %v1075_v17 = vadd.f32 %v1074_v13, %v1012_v11  ;;  %v1465_v18 = vpop.f32.mrb[20].mxu0  ;;  %v943_v19 = vadd.f32 %v1462_v4, %v942_v12  ;;  %v2154_v20 = vpop.f32.mrb[20].mxu1 }
 0x174   : > { %883 = vst [vmem:[%s2054_s23 + $0xb0] sm:$0xff] %v1465_v18  ;;  %v686_v22 = vpop.f32.mrb[21].mxu0  ;;  %915 = vst [vmem:[%s2054_s23 + $0x1b0] sm:$0xff] %v2154_v20  ;;  %v2159_v24 = vpop.f32.mrb[21].mxu1  ;;  %v1016_v37 = vmul.f32 %v1465_v18, %v1465_v18 }
 0x175   : > { %881 = vst [vmem:[%s2054_s23 + $0xa0] sm:$0xff] %v686_v22  ;;  %v944_v25 = vadd.f32 %v943_v19, %v686_v22  ;;  %v1014_v26 = vmul.f32 %v686_v22, %v686_v22  ;;  %v1076_v27 = vadd.f32 %v1075_v17, %v1013_v15  ;;  %v1466_v28 = vpop.f32.mrb[22].mxu0  ;;  %913 = vst [vmem:[%s2054_s23 + $0x1a0] sm:$0xff] %v2159_v24  ;;  %v2164_v29 = vpop.f32.mrb[22].mxu1 }
 0x176   : > { %884 = vst [vmem:[%s2054_s23 + $0xb8] sm:$0xff] %v1466_v28  ;;  %v689_v30 = vpop.f32.mrb[23].mxu0  ;;  %916 = vst [vmem:[%s2054_s23 + $0x1b8] sm:$0xff] %v2164_v29  ;;  %v2169_v31 = vpop.f32.mrb[23].mxu1  ;;  %v1017_v40 = vmul.f32 %v1466_v28, %v1466_v28 }
 0x177   : > { %v1077_v32 = vadd.f32 %v1076_v27, %v1014_v26  ;;  %882 = vst [vmem:[%s2054_s23 + $0xa8] sm:$0xff] %v689_v30  ;;  %v945_v33 = vadd.f32 %v944_v25, %v689_v30  ;;  %v1015_v35 = vmul.f32 %v689_v30, %v689_v30  ;;  %914 = vst [vmem:[%s2054_s23 + $0x1a8] sm:$0xff] %v2169_v31 }
 0x179   : > { %v946_v38 = vadd.f32 %v1465_v18, %v945_v33  ;;  %v1078_v39 = vadd.f32 %v1077_v32, %v1015_v35 }
 0x17b   : > { %v1079_v44 = vadd.f32 %v1078_v39, %v1016_v37  ;;  %v1469_v48 = vpop.f32.mrb[24].mxu0  ;;  %v947_v49 = vadd.f32 %v1466_v28, %v946_v38  ;;  %v2174_v50 = vpop.f32.mrb[24].mxu1 }
 0x17c   : > { %887 = vst [vmem:[%s2054_s23 + $0xd0] sm:$0xff] %v1469_v48  ;;  %v702_v51 = vpop.f32.mrb[25].mxu0  ;;  %919 = vst [vmem:[%s2054_s23 + $0x1d0] sm:$0xff] %v2174_v50  ;;  %v2179_v52 = vpop.f32.mrb[25].mxu1  ;;  %v1020_v6 = vmul.f32 %v1469_v48, %v1469_v48 }
 0x17d   : > { %885 = vst [vmem:[%s2054_s23 + $0xc0] sm:$0xff] %v702_v51  ;;  %v948_v53 = vadd.f32 %v947_v49, %v702_v51  ;;  %v1018_v54 = vmul.f32 %v702_v51, %v702_v51  ;;  %v1080_v55 = vadd.f32 %v1079_v44, %v1017_v40  ;;  %v1470_v56 = vpop.f32.mrb[26].mxu0  ;;  %917 = vst [vmem:[%s2054_s23 + $0x1c0] sm:$0xff] %v2179_v52  ;;  %v2184_v57 = vpop.f32.mrb[26].mxu1 }
 0x17e   : > { %888 = vst [vmem:[%s2054_s23 + $0xd8] sm:$0xff] %v1470_v56  ;;  %v705_v61 = vpop.f32.mrb[27].mxu0  ;;  %920 = vst [vmem:[%s2054_s23 + $0x1d8] sm:$0xff] %v2184_v57  ;;  %v2189_v63 = vpop.f32.mrb[27].mxu1  ;;  %v1021_v10 = vmul.f32 %v1470_v56, %v1470_v56 }
 0x17f   : > { %v1081_v0 = vadd.f32 %v1080_v55, %v1018_v54  ;;  %886 = vst [vmem:[%s2054_s23 + $0xc8] sm:$0xff] %v705_v61  ;;  %v949_v2 = vadd.f32 %v948_v53, %v705_v61  ;;  %v1019_v4 = vmul.f32 %v705_v61, %v705_v61  ;;  %918 = vst [vmem:[%s2054_s23 + $0x1c8] sm:$0xff] %v2189_v63 }
 0x181   : > { %v950_v8 = vadd.f32 %v1469_v48, %v949_v2  ;;  %v1082_v9 = vadd.f32 %v1081_v0, %v1019_v4 }
 0x183   : > { %v1083_v11 = vadd.f32 %v1082_v9, %v1020_v6  ;;  %v1473_v12 = vpop.f32.mrb[28].mxu0  ;;  %v951_v13 = vadd.f32 %v1470_v56, %v950_v8  ;;  %v2196_v15 = vpop.f32.mrb[28].mxu1 }
 0x184   : > { %891 = vst [vmem:[%s2054_s23 + $0xf0] sm:$0xff] %v1473_v12  ;;  %v718_v17 = vpop.f32.mrb[29].mxu0  ;;  %923 = vst [vmem:[%s2054_s23 + $0x1f0] sm:$0xff] %v2196_v15  ;;  %v2201_v18 = vpop.f32.mrb[29].mxu1 }
 0x185   : > { %889 = vst [vmem:[%s2054_s23 + $0xe0] sm:$0xff] %v718_v17  ;;  %v952_v19 = vadd.f32 %v951_v13, %v718_v17  ;;  %v1022_v22 = vmul.f32 %v718_v17, %v718_v17  ;;  %v1084_v25 = vadd.f32 %v1083_v11, %v1021_v10  ;;  %v1474_v26 = vpop.f32.mrb[30].mxu0  ;;  %921 = vst [vmem:[%s2054_s23 + $0x1e0] sm:$0xff] %v2201_v18  ;;  %v2213_v27 = vpop.f32.mrb[30].mxu1 }
 0x186   : > { %892 = vst [vmem:[%s2054_s23 + $0xf8] sm:$0xff] %v1474_v26  ;;  %v721_v28 = vpop.f32.mrb[31].mxu0  ;;  %924 = vst [vmem:[%s2054_s23 + $0x1f8] sm:$0xff] %v2213_v27  ;;  %v2218_v30 = vpop.f32.mrb[31].mxu1 }
 0x187   : > { %v1085_v32 = vadd.f32 %v1084_v25, %v1022_v22  ;;  %890 = vst [vmem:[%s2054_s23 + $0xe8] sm:$0xff] %v721_v28  ;;  %v953_v33 = vadd.f32 %v952_v19, %v721_v28  ;;  %v1023_v35 = vmul.f32 %v721_v28, %v721_v28  ;;  %922 = vst [vmem:[%s2054_s23 + $0x1e8] sm:$0xff] %v2218_v30 }
 0x188   : > { %1705 = shalt.err (!%p1702_p7)
}
 0x189   : > { %s1706_s7 = scalar_lea.hbm %s2206_s29, 8192  ;;  %s1710_s21 = scalar_lea.hbm %s2432_s2, 16384 }
 0x18a   : > { %p1707_p9 = scmp.ne.s32.totalorder %s2206_s29, %s1706_s7  ;;  %p1711_p5 = scmp.lt.u32.totalorder %s2206_s29, %s2432_s2 }
 0x18b   : > { %p1712_p11 = scmp.lt.u32.totalorder %s1710_s21, %s1706_s7  ;;  %p1714_p4 = scmp.lt.u32.totalorder %s1706_s7, %s2206_s29 }
 0x18c   : > { %p1708_p1 = pnand %p1707_p9, %p1954_p12 }
 0x18d   : > { %p1713_p2 = por %p1712_p11, %p1711_p5 }
 0x18e   : > { %p1709_p0 = pneg %p1708_p1 }
 0x18f   : > { %p1715_p6 = por %p1714_p4, %p1713_p2 }
 0x191   : > { %p1716_p8 = pnand %p1715_p6, %p1709_p0 }
 0x193   : > { %1719 = shalt.err (!%p1716_p8)
}
 0x194   : > { %s1829_s10 = smov 128   ;;  %s1830_s28 = smov 8   ;;  %v1024_v37 = vmul.f32 %v1473_v12, %v1473_v12  ;;  %v954_v38 = vadd.f32 %v1473_v12, %v953_v33  ;;  %v1086_v39 = vadd.f32 %v1085_v32, %v1023_v35  ;;  %v1025_v40 = vmul.f32 %v1474_v26, %v1474_v26 }
 0x195   : > { %1529 = dma.vmem_to_hbm [thread:$0]  (%p1954_p12), %s2208_s13, 8192, %s2206_s29, %s1130_s11, %s1829_s10, %s1829_s10, %s1830_s28   ;;  %v1026_v49 = vmul.f32 %v2059_v43, %v2059_v43  ;;  %v1027_v56 = vmul.f32 %v2069_v47, %v2069_v47  ;;  %v1028_v61 = vmul.f32 %v2052_v41, %v2052_v41  ;;  %v1029_v4 = vmul.f32 %v2064_v45, %v2064_v45 }
 0x196   : > { %v1087_v44 = vadd.f32 %v1086_v39, %v1024_v37  ;;  %v955_v48 = vadd.f32 %v1474_v26, %v954_v38  ;;  %v1031_v12 = vmul.f32 %v2089_v3, %v2089_v3  ;;  %v1035_v32 = vmul.f32 %v2109_v23, %v2109_v23  ;;  %s1334_s13 = sshll.u32 %s2005_s14, 3  ;;  %s1134_s29 = sand.u32 1, %s1879_s19  }
 0x197   : > { %s1381_s11 = sshll.u32 %s1879_s19, 7  ;;  %s241_s26 = scalar_lea.vmem [#allocation8], %s1334_s13 }
 0x198   : > { %v956_v51 = vadd.f32 %v955_v48, %v2059_v43  ;;  %v1088_v53 = vadd.f32 %v1087_v44, %v1025_v40  ;;  %v1030_v43 = vmul.f32 %v2079_v60, %v2079_v60  ;;  %v1039_v48 = vmul.f32 %v2129_v46, %v2129_v46  ;;  %s1169_s25 = sshll.u32 %s241_s26, 4  ;;  %s2346_s24 = scalar_lea.vmem [#allocation10], %s1334_s13  ;;  %s2354_s25 = int_to_ptr.vmem [resolvable:$true] %s1169_s25 }
 0x199   : > { %s1182_s6 = sshll.u32 %s2346_s24, 4  ;;  %s2352_s8 = scalar_lea.hbm %s2433_s3, %s1381_s11  ;;  %s2361_s6 = int_to_ptr.vmem [resolvable:$true] %s1182_s6 }
 0x19a   : > { %v1089_v54 = vadd.f32 %v1088_v53, %v1026_v49  ;;  %v957_v55 = vadd.f32 %v956_v51, %v2069_v47  ;;  %s2359_s21 = scalar_lea.hbm %s2434_s4, %s1381_s11  ;;  %s2363_s23 = scalar_lea.sflag [#allocation9], %s1134_s29 }
 0x19b   : > { %s1720_s12 = scalar_lea.vmem %s2354_s25, 128  ;;  %s1831_s10 = smov [#allocation8]  }
 0x19c   : > { %v958_v0 = vadd.f32 %v2052_v41, %v957_v55  ;;  %v1090_v2 = vadd.f32 %v1089_v54, %v1027_v56  ;;  %v1032_v41 = vmul.f32 %v2074_v58, %v2074_v58  ;;  %p1721_p10 = scmp.ne.s32.totalorder %s2354_s25, %s1720_s12  ;;  %s1724_s28 = sshll.u32 %s1831_s10, 4  ;;  %s1725_s28 = int_to_ptr.vmem [resolvable:$false] %s1724_s28 }
 0x19d   : > { %s1726_s13 = scalar_lea.vmem %s1725_s28, 256  ;;  %p1727_p7 = scmp.lt.s32.totalorder %s2354_s25, %s1725_s28 }
 0x19e   : > { %v1091_v6 = vadd.f32 %v1090_v2, %v1028_v61  ;;  %v959_v8 = vadd.f32 %v2064_v45, %v958_v0  ;;  %v1033_v45 = vmul.f32 %v2084_v1, %v2084_v1  ;;  %v1043_v0 = vmul.f32 %v2149_v7, %v2149_v7  ;;  %p1722_p13 = pnand %p1721_p10, %p1954_p12  ;;  %p1728_p9 = scmp.lt.s32.totalorder %s1726_s13, %s1720_s12 }
 0x1a0   : > { %v960_v9 = vadd.f32 %v959_v8, %v2079_v60  ;;  %v1092_v10 = vadd.f32 %v1091_v6, %v1029_v4  ;;  %v1034_v60 = vmul.f32 %v2099_v16, %v2099_v16  ;;  %p1723_p3 = pneg %p1722_p13  ;;  %p1729_p1 = por %p1728_p9, %p1727_p7 }
 0x1a2   : > { %v1093_v11 = vadd.f32 %v1092_v10, %v1030_v43  ;;  %v961_v47 = vadd.f32 %v960_v9, %v2089_v3  ;;  %p1730_p0 = pnand %p1729_p1, %p1723_p3 }
 0x1a4   : > { %v962_v13 = vadd.f32 %v2074_v58, %v961_v47  ;;  %v1094_v17 = vadd.f32 %v1093_v11, %v1031_v12  ;;  %v1036_v58 = vmul.f32 %v2094_v14, %v2094_v14  ;;  %v1047_v11 = vmul.f32 %v2169_v31, %v2169_v31 }
 0x1a6   : > { %v1095_v19 = vadd.f32 %v1094_v17, %v1032_v41  ;;  %v963_v22 = vadd.f32 %v2084_v1, %v962_v13  ;;  %v1037_v1 = vmul.f32 %v2104_v21, %v2104_v21 }
 0x1a8   : > { %v964_v25 = vadd.f32 %v963_v22, %v2099_v16  ;;  %v1096_v26 = vadd.f32 %v1095_v19, %v1033_v45  ;;  %v1038_v16 = vmul.f32 %v2119_v36, %v2119_v36  ;;  %v1051_v22 = vmul.f32 %v2189_v63, %v2189_v63 }
 0x1aa   : > { %v1097_v28 = vadd.f32 %v1096_v26, %v1034_v60  ;;  %v965_v3 = vadd.f32 %v964_v25, %v2109_v23 }
 0x1ac   : > { %v966_v33 = vadd.f32 %v2094_v14, %v965_v3  ;;  %v1098_v35 = vadd.f32 %v1097_v28, %v1035_v32  ;;  %v1040_v14 = vmul.f32 %v2114_v34, %v2114_v34  ;;  %v1054_v28 = vmul.f32 %v2201_v18, %v2201_v18 }
 0x1ae   : > { %v1099_v37 = vadd.f32 %v1098_v35, %v1036_v58  ;;  %v967_v38 = vadd.f32 %v2104_v21, %v966_v33  ;;  %v1041_v21 = vmul.f32 %v2124_v42, %v2124_v42  ;;  %v1056_v33 = vmul.f32 %v2196_v15, %v2196_v15 }
 0x1b0   : > { %v968_v39 = vadd.f32 %v967_v38, %v2119_v36  ;;  %v1100_v40 = vadd.f32 %v1099_v37, %v1037_v1  ;;  %v1042_v36 = vmul.f32 %v2139_v62, %v2139_v62  ;;  %v1057_v1 = vmul.f32 %v2213_v27, %v2213_v27 }
 0x1b2   : > { %v1101_v44 = vadd.f32 %v1100_v40, %v1038_v16  ;;  %v969_v23 = vadd.f32 %v968_v39, %v2129_v46 }
 0x1b4   : > { %v970_v49 = vadd.f32 %v2114_v34, %v969_v23  ;;  %v1102_v51 = vadd.f32 %v1101_v44, %v1039_v48  ;;  %v1044_v34 = vmul.f32 %v2134_v59, %v2134_v59 }
 0x1b6   : > { %v1103_v53 = vadd.f32 %v1102_v51, %v1040_v14  ;;  %v971_v54 = vadd.f32 %v2124_v42, %v970_v49  ;;  %v1045_v42 = vmul.f32 %v2144_v5, %v2144_v5 }
 0x1b8   : > { %v972_v55 = vadd.f32 %v971_v54, %v2139_v62  ;;  %v1104_v56 = vadd.f32 %v1103_v53, %v1041_v21  ;;  %v1046_v62 = vmul.f32 %v2159_v24, %v2159_v24 }
 0x1ba   : > { %v1105_v61 = vadd.f32 %v1104_v56, %v1042_v36  ;;  %v973_v46 = vadd.f32 %v972_v55, %v2149_v7 }
 0x1bc   : > { %v974_v2 = vadd.f32 %v2134_v59, %v973_v46  ;;  %v1106_v4 = vadd.f32 %v1105_v61, %v1043_v0  ;;  %v1048_v59 = vmul.f32 %v2154_v20, %v2154_v20 }
 0x1be   : > { %v1107_v6 = vadd.f32 %v1106_v4, %v1044_v34  ;;  %v975_v8 = vadd.f32 %v2144_v5, %v974_v2  ;;  %v1049_v5 = vmul.f32 %v2164_v29, %v2164_v29 }
 0x1c0   : > { %v976_v43 = vadd.f32 %v975_v8, %v2159_v24  ;;  %v1108_v9 = vadd.f32 %v1107_v6, %v1045_v42  ;;  %v1050_v24 = vmul.f32 %v2179_v52, %v2179_v52 }
 0x1c2   : > { %v1109_v10 = vadd.f32 %v1108_v9, %v1046_v62  ;;  %v977_v7 = vadd.f32 %v976_v43, %v2169_v31 }
 0x1c4   : > { %v978_v47 = vadd.f32 %v2154_v20, %v977_v7  ;;  %v1110_v12 = vadd.f32 %v1109_v10, %v1047_v11  ;;  %v1052_v20 = vmul.f32 %v2174_v50, %v2174_v50 }
 0x1c6   : > { %v1111_v41 = vadd.f32 %v1110_v12, %v1048_v59  ;;  %v979_v13 = vadd.f32 %v2164_v29, %v978_v47  ;;  %v1053_v29 = vmul.f32 %v2184_v57, %v2184_v57 }
 0x1c8   : > { %v980_v17 = vadd.f32 %v979_v13, %v2179_v52  ;;  %v1112_v45 = vadd.f32 %v1111_v41, %v1049_v5 }
 0x1ca   : > { %v1113_v19 = vadd.f32 %v1112_v45, %v1050_v24  ;;  %v981_v31 = vadd.f32 %v980_v17, %v2189_v63 }
 0x1cc   : > { %v982_v60 = vadd.f32 %v2174_v50, %v981_v31  ;;  %v1114_v25 = vadd.f32 %v1113_v19, %v1051_v22  ;;  %v1055_v50 = vmul.f32 %v2218_v30, %v2218_v30 }
 0x1ce   : > { %v1115_v26 = vadd.f32 %v1114_v25, %v1052_v20  ;;  %v983_v52 = vadd.f32 %v2184_v57, %v982_v60 }
 0x1d0   : > { %v984_v3 = vadd.f32 %v983_v52, %v2201_v18  ;;  %v1116_v32 = vadd.f32 %v1115_v26, %v1053_v29 }
 0x1d2   : > { %v1117_v63 = vadd.f32 %v1116_v32, %v1054_v28  ;;  %v985_v58 = vadd.f32 %v984_v3, %v2218_v30 }
 0x1d4   : > { %v986_v35 = vadd.f32 %v2196_v15, %v985_v58  ;;  %v1118_v57 = vadd.f32 %v1117_v63, %v1055_v50 }
 0x1d6   : > { %v987_v18 = vadd.f32 %v2213_v27, %v986_v35  ;;  %v1119_v37 = vadd.f32 %v1118_v57, %v1056_v33 }
 0x1d8   : > { %v988_v38 = vrot.slane %v987_v18, 4  ;;  %v1120_v16 = vadd.f32 %v1119_v37, %v1057_v1 }
 0x1da   : > { %v989_v39 = vadd.f32 %v988_v38, %v987_v18  ;;  %v1121_v40 = vrot.slane %v1120_v16, 4 }
 0x1dc   : > { %v990_v30 = vrot.slane %v989_v39, 2  ;;  %v1122_v44 = vadd.f32 %v1121_v40, %v1120_v16 }
 0x1de   : > { %v991_v23 = vadd.f32 %v990_v30, %v989_v39  ;;  %v1123_v48 = vrot.slane %v1122_v44, 2 }
 0x1e0   : > { %v992_v15 = vrot.slane %v991_v23, 1  ;;  %v1124_v14 = vadd.f32 %v1123_v48, %v1122_v44 }
 0x1e2   : > { %v1125_v27 = vrot.slane %v1124_v14, 1  ;;  %v993_v49 = vadd.f32 %v992_v15, %v991_v23 }
 0x1e4   : > { %1127 = vst [vmem:[%s241_s26] sm:$0xff] %v993_v49  ;;  %v1126_v51 = vadd.f32 %v1125_v27, %v1124_v14 }
 0x1e5   : > { %1733 = shalt.err (!%p1730_p0)
}
 0x1e6   : > { %s1734_s29 = scalar_lea.hbm %s2352_s8, 128  ;;  %s1738_s14 = scalar_lea.hbm %s2433_s3, 256 }
 0x1e7   : > { %p1735_p5 = scmp.ne.s32.totalorder %s2352_s8, %s1734_s29  ;;  %p1739_p4 = scmp.lt.u32.totalorder %s2352_s8, %s2433_s3 }
 0x1e8   : > { %p1740_p6 = scmp.lt.u32.totalorder %s1738_s14, %s1734_s29  ;;  %p1742_p10 = scmp.lt.u32.totalorder %s1734_s29, %s2352_s8 }
 0x1e9   : > { %p1736_p11 = pnand %p1735_p5, %p1954_p12 }
 0x1ea   : > { %p1741_p8 = por %p1740_p6, %p1739_p4 }
 0x1eb   : > { %p1737_p2 = pneg %p1736_p11 }
 0x1ec   : > { %p1743_p13 = por %p1742_p10, %p1741_p8 }
 0x1ee   : > { %p1744_p3 = pnand %p1743_p13, %p1737_p2 }
 0x1f0   : > { %1747 = shalt.err (!%p1744_p3)
}
 0x1f1   : > { %1530 = dma.vmem_to_hbm [thread:$0]  (%p1954_p12), %s2354_s25, 128, %s2352_s8, %s2363_s23   ;;  %1128 = vst [vmem:[%s2346_s24] sm:$0xff] %v1126_v51 }
 0x1f2   : > { %s1748_s9 = scalar_lea.vmem %s2361_s6, 128  ;;  %s1832_s12 = smov [#allocation10]  }
 0x1f3   : > { %p1749_p7 = scmp.ne.s32.totalorder %s2361_s6, %s1748_s9  ;;  %s1752_s10 = sshll.u32 %s1832_s12, 4  ;;  %s1753_s10 = int_to_ptr.vmem [resolvable:$false] %s1752_s10 }
 0x1f4   : > { %s1754_s28 = scalar_lea.vmem %s1753_s10, 256  ;;  %p1755_p0 = scmp.lt.s32.totalorder %s2361_s6, %s1753_s10 }
 0x1f5   : > { %p1750_p9 = pnand %p1749_p7, %p1954_p12  ;;  %p1756_p5 = scmp.lt.s32.totalorder %s1754_s28, %s1748_s9 }
 0x1f7   : > { %p1751_p1 = pneg %p1750_p9  ;;  %p1757_p11 = por %p1756_p5, %p1755_p0 }
 0x1f9   : > { %p1758_p2 = pnand %p1757_p11, %p1751_p1 }
 0x1fb   : > { %1761 = shalt.err (!%p1758_p2)
}
 0x1fc   : > { %s1762_s25 = scalar_lea.hbm %s2359_s21, 128  ;;  %s1766_s13 = scalar_lea.hbm %s2434_s4, 256 }
 0x1fd   : > { %p1763_p4 = scmp.ne.s32.totalorder %s2359_s21, %s1762_s25  ;;  %p1767_p10 = scmp.lt.u32.totalorder %s2359_s21, %s2434_s4 }
 0x1fe   : > { %p1768_p13 = scmp.lt.u32.totalorder %s1766_s13, %s1762_s25  ;;  %p1770_p7 = scmp.lt.u32.totalorder %s1762_s25, %s2359_s21 }
 0x1ff   : > { %p1764_p6 = pnand %p1763_p4, %p1954_p12 }
 0x200   : > { %p1769_p3 = por %p1768_p13, %p1767_p10 }
 0x201   : > { %p1765_p8 = pneg %p1764_p6 }
 0x202   : > { %p1771_p9 = por %p1770_p7, %p1769_p3 }
 0x204   : > { %p1772_p1 = pnand %p1771_p9, %p1765_p8 }
 0x206   : > { %1775 = shalt.err (!%p1772_p1)
}
 0x207   : > { %1531 = dma.vmem_to_hbm [thread:$0]  (%p1954_p12), %s2361_s6, 128, %s2359_s21, %s2363_s23  }
 0x208 PF: > { %s1194_s26 = sand.u32 1, %s1810_s15   ;;  %p2449_p0 = scmp.ne.s32.totalorder %s2439_s22, 0 }
 0x209   : > { %p2450_p5 = scmp.ge.s32.totalorder %s1822_s18, 2  ;;  %s1195_s14 = scalar_lea.sflag [#allocation4], %s1194_s26 }
 0x20b   : > { %p1544_p11 = pnand %p2450_p5, %p2449_p0 }
 0x20d   : > { %1801 = dma.done.wait (!%p1544_p11), %s1195_s14, 8192  }
 0x20e   : > { %1803 = vsyncadd (!%p1544_p11), %s1195_s14, 4294959104  ;;  %s1203_s7 = sand.u32 1, %s1323_s20  }
 0x20f   : > { %s1204_s19 = scalar_lea.sflag [#allocation9], %s1203_s7 }
 0x210   : > { %1805 = dma.done.wait (!%p1544_p11), %s1204_s19, 256  }
 0x211   : > { %1807 = vsyncadd (!%p1544_p11), %s1204_s19, 4294967040  ;;  %p22_p12 = scmp.ge.s32.totalorder %s1916_s27, 4   ;;  %s2451_s15 = smov %s1814_s16 }
 0x212   : > { %s2452_s16 = smov %s1818_s17  ;;  %s2453_s17 = smov %s1950_s30 }
 0x213   : > { %s2454_s18 = smov %s1916_s27  ;;  %24 = sbr.rel (!%p22_p12) target bundleno = 8 (0x8), region = 109 }
 0x21a   :  { %1218 = vsyncpa [#allocation3], 1 }
 0x21b   :  { %1220 = vsyncpa [#allocation3 + $0x1], 1 }
 0x21c   :  { %1221 = vsyncpa [#allocation6], 1 }
 0x21d   :  { %1222 = vsyncpa [#allocation4], 1 }
 0x21e   :  { %1224 = vsyncpa [#allocation4 + $0x1], 1 }
 0x21f   :  { %1225 = vsyncpa [#allocation9], 1 }
 0x220   :  { %1227 = vsyncpa [#allocation9 + $0x1], 1 }

</bundles_post_ra>
